<compile_context>
chip_gen: v7x
topology: tpu7x:2x2x1
jax: 0.10.0
libtpu: 0.0.40
codegen_flags: <defaults>
</compile_context>

<pallas_src>
import functools
import math

import jax
import jax.numpy as jnp
from jax.experimental import pallas as pl
from jax.experimental.pallas import tpu as pltpu


def _round_up(x, m):
    return ((x + m - 1) // m) * m


def _loss_embed_kernel(scores_ref, loss_ref, *, n_valid, tb):
    """One row tile: per-row CE(one-hot @ argmax) == logsumexp - max, accumulated."""
    i = pl.program_id(0)

    @pl.when(i == 0)
    def _init():
        loss_ref[...] = jnp.zeros_like(loss_ref)

    s = scores_ref[...].astype(jnp.float32)            # (TB, HW)
    m = jnp.max(s, axis=1, keepdims=True)              # (TB, 1) row max
    # CE with a one-hot target placed at the row argmax:
    #   -log_softmax(s)[argmax] = logsumexp(s) - max(s) = log(sum(exp(s - max)))
    row_loss = jnp.log(jnp.sum(jnp.exp(s - m), axis=1, keepdims=True))  # (TB, 1)

    # zero the contribution of padded rows (global row index >= n_valid)
    row_idx = i * tb + jax.lax.broadcasted_iota(jnp.int32, (tb, 1), 0)
    row_loss = jnp.where(row_idx < n_valid, row_loss, 0.0)

    loss_ref[...] += jnp.sum(row_loss, keepdims=True)   # (1, 1) resident accumulator

    @pl.when(i == pl.num_programs(0) - 1)
    def _finalize():
        loss_ref[...] = loss_ref[...] * (1.0 / float(n_valid))   # mean over batch


def loss_embed_semantic(scores_raw, *, row_tile=256):
    """CrossEntropy(scores, one_hot(argmax(scores))) averaged over the batch rows."""
    b = scores_raw.shape[0]
    hw = 1
    for d in scores_raw.shape[1:]:
        hw *= d
    scores = scores_raw.reshape(b, hw)

    # Row tile: multiple of 8 (sublane), sized so the double-buffered input tile
    # stays well inside the default scoped-VMEM limit on every generation
    # (16 MiB v5e / 32 MiB v6e+v7x; v7x has only 64 MiB physical VMEM).
    itemsize = jnp.dtype(scores.dtype).itemsize
    max_tile_bytes = 8 * 1024 * 1024
    max_rows = max(8, (max_tile_bytes // (2 * hw * itemsize)) // 8 * 8)
    tb = int(min(row_tile, max_rows, _round_up(b, 8)))

    b_pad = _round_up(b, tb)
    if b_pad != b:
        scores = jnp.pad(scores, ((0, b_pad - b), (0, 0)))   # masked inside kernel

    kern = functools.partial(_loss_embed_kernel, n_valid=b, tb=tb)
    out = pl.pallas_call(
        kern,
        grid=(b_pad // tb,),
        out_shape=jax.ShapeDtypeStruct((1, 1), jnp.float32),
        in_specs=[pl.BlockSpec((tb, hw), lambda i: (i, 0))],
        out_specs=pl.BlockSpec((1, 1), lambda i: (0, 0)),
        compiler_params=pltpu.CompilerParams(
            # the single grid axis carries the (1,1) accumulator -> "arbitrary"
            dimension_semantics=("arbitrary",),
        ),
    )(scores)
    return out[0, 0]


def loss_embed_forward(scores_raw, neg_mask=None, eps=1e-8):
    """Mirrors loss_embed.forward: returns (loss, loss_perfect) dicts."""
    del neg_mask, eps  # accepted for interface parity; unused by the torch math
    loss_semantic = loss_embed_semantic(scores_raw)
    loss_spatial = None                     # get_score_spatial returns None
    loss = {"total": loss_semantic, "easy": loss_semantic, "hard": loss_spatial}
    loss_perfect = {
        "total": 0.0,
        "random": jnp.asarray([-math.log10(0.5)], dtype=jnp.float32),
    }
    return loss, loss_perfect


# ---------------- pure-JAX reference (mirrors the torch code) ----------------
def _ref_loss_semantic(scores_raw):
    s = scores_raw.reshape(scores_raw.shape[0], -1).astype(jnp.float32)
    hots = jnp.argmax(s, axis=1)
    logp = jax.nn.log_softmax(s, axis=1)
    return -jnp.mean(jnp.take_along_axis(logp, hots[:, None], axis=1))


if __name__ == "__main__":
    B, H, W = 8, 8, 8          # small (b, h, w) score maps
    key = jax.random.PRNGKey(0)
    k1, k2, k3 = jax.random.split(key, 3)
    scores_raw = jax.random.normal(k1, (B, H, W), dtype=jnp.float32)
    neg_mask = (jax.random.uniform(k2, (B, H, W)) > 0.2).astype(jnp.float32)

    loss, loss_perfect = loss_embed_forward(scores_raw, neg_mask)
    jax.block_until_ready(loss["total"])

    ok = True
    ok &= bool(jnp.allclose(loss["total"], _ref_loss_semantic(scores_raw),
                            rtol=1e-5, atol=1e-5))
    ok &= bool(jnp.allclose(loss["easy"], loss["total"]))
    ok &= loss["hard"] is None
    ok &= loss_perfect["total"] == 0.0
    ok &= bool(jnp.allclose(loss_perfect["random"],
                            -jnp.log10(jnp.float32(0.5)), rtol=1e-6, atol=1e-6))

    # also exercise multi-tile accumulation (grid > 1) and row padding/masking
    s2 = jax.random.normal(k3, (22, 4, 8), dtype=jnp.float32)   # 22 rows -> pad to 24
    got2 = loss_embed_semantic(s2, row_tile=8)                  # grid=(3,)
    jax.block_until_ready(got2)
    ok &= bool(jnp.allclose(got2, _ref_loss_semantic(s2), rtol=1e-5, atol=1e-5))

    if not ok:
        raise AssertionError("Pallas kernel does not match reference")
    print("KERNEL_OK")
</pallas_src>

<mosaic_0001>
module attributes {stable_mosaic.version = 11 : i64} {
  func.func @_loss_embed_kernel(%arg0: i32, %arg1: memref<8x64xf32, #tpu.memory_space<vmem>>, %arg2: memref<1x1xf32, #tpu.memory_space<vmem>>) attributes {dimension_semantics = [#tpu.dimension_semantics<arbitrary>], iteration_bounds = array<i64: 1>, scalar_prefetch = 0 : i64, scratch_operands = 0 : i64, tpu.core_type = #tpu.core_type<tc>, window_params = [{transform_indices = @transform_0, window_bounds = array<i64: 8, 64>}, {pipeline_mode = #tpu.pipeline_mode<synchronous>, transform_indices = @transform_1, window_bounds = array<i64: 1, 1>}]} {
    %c0_i32 = arith.constant 0 : i32
    %0 = arith.cmpi eq, %arg0, %c0_i32 : i32
    %1 = arith.extui %0 : i1 to i32
    %c0_i32_0 = arith.constant 0 : i32
    %2 = arith.cmpi ne, %1, %c0_i32_0 : i32
    scf.if %2 {
      %cst_12 = arith.constant 0.000000e+00 : f32
      %31 = vector.broadcast %cst_12 : f32 to vector<1x1xf32>
      %c0_13 = arith.constant 0 : index
      %c0_14 = arith.constant 0 : index
      %32 = vector.load %arg2[%c0_13, %c0_14] : memref<1x1xf32, #tpu.memory_space<vmem>>, vector<1x1xf32>
      tpu.vector_store %arg2[%c0_13, %c0_14], %31 {strides = array<i32>} : memref<1x1xf32, #tpu.memory_space<vmem>>, vector<1x1xf32>,
    } else {
    }
    %c0 = arith.constant 0 : index
    %c0_1 = arith.constant 0 : index
    %3 = vector.load %arg1[%c0, %c0_1] : memref<8x64xf32, #tpu.memory_space<vmem>>, vector<8x64xf32>
    %cst = arith.constant dense<0xFF800000> : vector<8xf32>
    %4 = vector.multi_reduction <maximumf>, %3, %cst [1] : vector<8x64xf32> to vector<8xf32>
    %5 = vector.shape_cast %4 : vector<8xf32> to vector<8x1xf32>
    %6 = vector.broadcast %5 : vector<8x1xf32> to vector<8x64xf32>
    %7 = arith.subf %3, %6 : vector<8x64xf32>
    %8 = math.exp %7 : vector<8x64xf32>
    %cst_2 = arith.constant dense<0.000000e+00> : vector<8xf32>
    %9 = vector.multi_reduction <add>, %8, %cst_2 [1] : vector<8x64xf32> to vector<8xf32>
    %10 = vector.shape_cast %9 : vector<8xf32> to vector<8x1xf32>
    %11 = math.log %10 : vector<8x1xf32>
    %c8_i32 = arith.constant 8 : i32
    %12 = arith.muli %arg0, %c8_i32 : i32
    %13 = tpu.iota {dimensions = array<i32: 0>} : vector<8x1xi32>
    %14 = vector.broadcast %12 : i32 to vector<8x1xi32>
    %15 = arith.addi %14, %13 : vector<8x1xi32>
    %c8_i32_3 = arith.constant 8 : i32
    %16 = vector.broadcast %c8_i32_3 : i32 to vector<8x1xi32>
    %17 = arith.cmpi slt, %15, %16 : vector<8x1xi32>
    %cst_4 = arith.constant 0.000000e+00 : f32
    %18 = vector.broadcast %cst_4 : f32 to vector<8x1xf32>
    %19 = arith.select %17, %11, %18 : vector<8x1xi1>, vector<8x1xf32>
    %c0_5 = arith.constant 0 : index
    %c0_6 = arith.constant 0 : index
    %20 = vector.load %arg2[%c0_5, %c0_6] : memref<1x1xf32, #tpu.memory_space<vmem>>, vector<1x1xf32>
    %21 = vector.shape_cast %19 : vector<8x1xf32> to vector<1x8x1xf32>
    %cst_7 = arith.constant dense<0.000000e+00> : vector<1xf32>
    %22 = vector.multi_reduction <add>, %21, %cst_7 [1, 2] : vector<1x8x1xf32> to vector<1xf32>
    %23 = vector.shape_cast %22 : vector<1xf32> to vector<1x1x1xf32>
    %24 = vector.extract %23[0, 0, 0] : f32 from vector<1x1x1xf32>
    %25 = vector.broadcast %24 : f32 to vector<1x1xf32>
    %26 = arith.addf %20, %25 : vector<1x1xf32>
    %c0_8 = arith.constant 0 : index
    %c0_9 = arith.constant 0 : index
    %27 = vector.load %arg2[%c0_8, %c0_9] : memref<1x1xf32, #tpu.memory_space<vmem>>, vector<1x1xf32>
    tpu.vector_store %arg2[%c0_8, %c0_9], %26 {strides = array<i32>} : memref<1x1xf32, #tpu.memory_space<vmem>>, vector<1x1xf32>,
    %c0_i32_10 = arith.constant 0 : i32
    %28 = arith.cmpi eq, %arg0, %c0_i32_10 : i32
    %29 = arith.extui %28 : i1 to i32
    %c0_i32_11 = arith.constant 0 : i32
    %30 = arith.cmpi ne, %29, %c0_i32_11 : i32
    scf.if %30 {
      %c0_12 = arith.constant 0 : index
      %c0_13 = arith.constant 0 : index
      %31 = vector.load %arg2[%c0_12, %c0_13] : memref<1x1xf32, #tpu.memory_space<vmem>>, vector<1x1xf32>
      %cst_14 = arith.constant 1.250000e-01 : f32
      %32 = vector.broadcast %cst_14 : f32 to vector<1x1xf32>
      %33 = arith.mulf %31, %32 : vector<1x1xf32>
      %c0_15 = arith.constant 0 : index
      %c0_16 = arith.constant 0 : index
      %34 = vector.load %arg2[%c0_15, %c0_16] : memref<1x1xf32, #tpu.memory_space<vmem>>, vector<1x1xf32>
      tpu.vector_store %arg2[%c0_15, %c0_16], %33 {strides = array<i32>} : memref<1x1xf32, #tpu.memory_space<vmem>>, vector<1x1xf32>,
    } else {
    }
    return
  }
  func.func @transform_0(%arg0: i32) -> (i32, i32) {
    %c0_i32 = arith.constant 0 : i32
    %c0_i32_0 = arith.constant 0 : i32
    return %arg0, %c0_i32 : i32, i32
  }
  func.func @transform_1(%arg0: i32) -> (i32, i32) {
    %c0_i32 = arith.constant 0 : i32
    %c0_i32_0 = arith.constant 0 : i32
    %c0_i32_1 = arith.constant 0 : i32
    return %c0_i32, %c0_i32_0 : i32, i32
  }
}

</mosaic_0001>

<bundles_post_ra>
// kernel: tpu_custom_call.1
= control target key start
LH: loop header
LB: loop body
LE: loop exit
PB: predicated region body
PF: predicated region fallthrough
CT: control target
= control target key end

     0   :  { %6 = vsyncpa [#allocation3], 0  ;;  %s181_s0 = inlined_call_operand.hbm [shape: f32[8,64], index: 0, kind: input, shape index: {}]   ;;  %s182_s1 = inlined_call_operand.hbm [shape: f32[1,1], index: 1, kind: output, shape index: {}]  }
   0x1   :  { %7 = vsyncpa [#allocation4], 0  ;;  %s141_s6 = smov [#allocation2]   ;;  %s93_s10 = scalar_lea.hbm %s181_s0, 128 }
   0x2   :  { %s14_s7 = sshll.u32 %s141_s6, 4  ;;  %p94_p0 = scmp.ne.s32.totalorder %s181_s0, %s93_s10  ;;  %s15_s7 = int_to_ptr.vmem [resolvable:$true] %s14_s7 }
   0x3   :  { %p97_p1 = scmp.lt.u32.totalorder %s93_s10, %s181_s0 }
   0x5   :  { %p99_p2 = pnand %p97_p1, %p94_p0 }
   0x7   :  { %102 = shalt.err (!%p99_p2)
}
   0x8   :  { %s103_s15 = scalar_lea.vmem %s15_s7, 128  ;;  %p108_p4 = scmp.lt.s32.totalorder %s15_s7, %s15_s7 }
   0x9   :  { %p104_p3 = scmp.ne.s32.totalorder %s15_s7, %s103_s15  ;;  %p109_p5 = scmp.lt.s32.totalorder %s103_s15, %s103_s15 }
   0xb   :  { %p110_p6 = por %p109_p5, %p108_p4 }
   0xd   :  { %p111_p7 = pnand %p110_p6, %p104_p3 }
   0xf   :  { %114 = shalt.err (!%p111_p7)
}
  0x10   :  { %17 = dma.hbm_to_vmem [thread:$0]  %s181_s0, 128, %s15_s7, [#allocation3]  }
  0x11   :  { %137 = dma.done.wait [#allocation3], 128  }
  0x12   :  { %138 = vsyncadd [#allocation3], 4294967168  ;;  %vm28_vm0 = vcmask 523264   ;;  %v27_v0 = vld [vmem:[#allocation2] sm:$0xff]  ;;  %vm48_vm1 = vcmask 7168   ;;  %vm25_vm2 = vcmask 0  }
  0x13   :  { %v29_v1 = vsel %vm28_vm0, %v27_v0, -inf  ;;  %v142_v11 = vmov 0.0   ;;  %s143_s18 = smov [#allocation5]  }
  0x14   :  { %30 = vmax.xlane.f32.xlu0 %v29_v1  ;;  %26 = vst.msk [vmem:[#allocation5] sm:$0x1] %vm25_vm2, %v142_v11  ;;  %s75_s19 = sshll.u32 %s143_s18, 4  ;;  %s76_s19 = int_to_ptr.vmem [resolvable:$true] %s75_s19 }
  0x15   :  { %s115_s20 = scalar_lea.vmem %s76_s19, 16  ;;  %s119_s21 = scalar_lea.vmem %s76_s19, 32 }
  0x16   :  { %p116_p8 = scmp.ne.s32.totalorder %s76_s19, %s115_s20  ;;  %p120_p9 = scmp.lt.s32.totalorder %s76_s19, %s76_s19 }
  0x17   :  { %p121_p10 = scmp.lt.s32.totalorder %s119_s21, %s115_s20 }
  0x19   :  { %p122_p11 = por %p121_p10, %p120_p9 }
  0x1b   :  { %v47_v19 = vld [vmem:[#allocation5] sm:$0x1]  ;;  %p123_p12 = pnand %p122_p11, %p116_p8 }
  0xa1   :  { %v31_v2 = vpop.xlane.xlu0 %30 }
  0xa2   :  { %v32_v3 = vsub.f32 %v27_v0, %v31_v2 }
  0xa4   :  { %v33_v4 = vmul.f32 1.442695, %v32_v3 }
  0xa6   :  { %89 = vpow2.f32 %v33_v4 }
  0xb0   :  { %v90_v5 = vpop.eup %89 }
  0xb1   :  { %v35_v6 = vsel %vm28_vm0, %v90_v5, 0.0 }
  0xb2   :  { %36 = vadd.xlane.f32.xlu0 %v35_v6 }
 0x13f   :  { %v37_v7 = vpop.xlane.xlu0 %36 }
 0x140   :  { %91 = vlog2.f32 %v37_v7 }
 0x14a   :  { %v92_v8 = vpop.eup %91 }
 0x14b   :  { %v39_v9 = vmul.f32 0.6931472, %v92_v8 }
 0x14d   :  { %v49_v10 = vsel %vm48_vm1, %v39_v9, 0.0 }
 0x14e   :  { %50 = vadd.xlane.f32.xlu1 %v49_v10 }
 0x1db   :  { %v51_v12 = vpop.xlane.xlu1 %50 }
 0x1dc   :  { %v52_v13 = vrot.slane %v51_v12, 4 }
 0x1de   :  { %v53_v14 = vadd.f32 %v52_v13, %v51_v12 }
 0x1e0   :  { %v54_v15 = vrot.slane %v53_v14, 2 }
 0x1e2   :  { %v55_v16 = vadd.f32 %v54_v15, %v53_v14 }
 0x1e4   :  { %v56_v17 = vrot.slane %v55_v16, 1 }
 0x1e6   :  { %v57_v18 = vadd.f32 %v56_v17, %v55_v16 }
 0x1e8   :  { %84 = vpush %v57_v18 }
 0x219   :  { %s85_s0 = spop %84 }
 0x21a   :  { %v59_v20 = vstv %s85_s0 }
 0x21b   :  { %v60_v21 = vadd.f32 %v59_v20, %v47_v19 }
 0x21d   :  { %62 = vst.msk [vmem:[#allocation5] sm:$0x1] %vm25_vm2, %v60_v21 }
 0x224   :  { %v66_v22 = vld [vmem:[#allocation5] sm:$0x1] }
 0x225   :  { %v67_v23 = vmul.f32 0.125, %v66_v22 }
 0x227   :  { %68 = vst.msk [vmem:[#allocation5] sm:$0x1] %vm25_vm2, %v67_v23 }
 0x228   :  { %126 = shalt.err (!%p123_p12)
}
 0x229   :  { %s127_s24 = scalar_lea.hbm %s182_s1, 16 }
 0x22a   :  { %p128_p13 = scmp.ne.s32.totalorder %s182_s1, %s127_s24  ;;  %p131_p0 = scmp.lt.u32.totalorder %s127_s24, %s182_s1 }
 0x22c   :  { %p133_p1 = pnand %p131_p0, %p128_p13 }
 0x22e   :  { %136 = shalt.err (!%p133_p1)
}
 0x22f   :  { %78 = dma.vmem_to_hbm [thread:$0]  %s76_s19, 16, %s182_s1, [#allocation4]  }
 0x230   :  { %139 = dma.done.wait [#allocation4], 16  }
 0x231   :  { %140 = vsyncadd [#allocation4], 4294967280 }
 0x232   :  { %82 = vsyncpa [#allocation3], 1 }
 0x233   :  { %83 = vsyncpa [#allocation4], 1 }

</bundles_post_ra>
